<compile_context>
chip_gen: v6e
topology: v6e:2x2x1
jax: 0.10.0
libtpu: 0.0.40
codegen_flags: <defaults>
</compile_context>

<pallas_src>
import functools

import jax
import jax.numpy as jnp
from jax.experimental import pallas as pl
from jax.experimental.pallas import tpu as pltpu

LANES = 128
SUBLANES = 8                       # f32 sublanes; partials are always f32 (8,128)
TARGET_TILE_BYTES = 4 << 20        # ~4 MiB of DMA per input per grid step
MIN_SPLIT_TILE_BYTES = 512 << 10   # only split for megacore if blocks stay >=512 KiB
_SUBLANE_BY_ITEMSIZE = {4: 8, 2: 16, 1: 32}


def _round_up(x, m):
    return ((x + m - 1) // m) * m


def _mape_partial_kernel(pred_ref, true_ref, out_ref, *, rows_total, tm, needs_mask):
    p = pred_ref[...].astype(jnp.float32)
    t = true_ref[...].astype(jnp.float32)

    eps = jnp.float32(1e-8)
    # Exact reciprocal on the EUP (free bundle slot) + VPU multiply instead of a
    # multi-op VALU divide. approx=False keeps full f32 accuracy.
    inv = pl.reciprocal(t + eps, approx=False)
    rel = jnp.abs((t - p) * inv)

    def _write(vals):
        # Fold tm rows into an (8, 128) lane-shaped partial sum: vreg-wise VPU
        # adds only, lane-dense (8,128) store.
        partial = vals.reshape(tm // SUBLANES, SUBLANES, LANES).sum(axis=0)
        out_ref[...] = partial.reshape(1, SUBLANES, LANES)

    if not needs_mask:
        # rows % tm == 0: every block is full, no masking anywhere.
        _write(rel)
    else:
        i = pl.program_id(0)
        is_last = i == pl.num_programs(0) - 1

        @pl.when(jnp.logical_not(is_last))
        def _():
            _write(rel)

        @pl.when(is_last)
        def _():
            # Only the genuinely partial last block pays for the mask. Build it
            # as (tm, 1) and let the select broadcast across lanes; masking rel
            # (rather than p/t) also neutralizes any Inf/NaN from padding rows.
            row_ids = jax.lax.broadcasted_iota(jnp.int32, (tm, 1), 0) + i * tm
            valid = row_ids < rows_total
            _write(jnp.where(valid, rel, jnp.float32(0.0)))


def _choose_tile_rows(rows, itemsize):
    """Pick rows-per-step from a byte budget, dtype sublane multiple, and a
    minimum block count so both v7x TensorCores get work on medium inputs."""
    sub = _SUBLANE_BY_ITEMSIZE.get(itemsize, 8)
    row_bytes = LANES * itemsize
    max_tm = max(sub, TARGET_TILE_BYTES // row_bytes)          # 8192 rows for f32
    min_rows_per_block = max(sub, MIN_SPLIT_TILE_BYTES // row_bytes)

    if rows >= 4 * min_rows_per_block:
        target = pl.cdiv(rows, 4)      # >= 2 blocks per TC on v7x
    elif rows >= 2 * min_rows_per_block:
        target = pl.cdiv(rows, 2)      # at least one block per TC
    else:
        target = rows                  # tiny input: one (possibly partial) block

    tm = min(max_tm, _round_up(target, sub))
    return max(tm, sub)


def mape_loss(y_pred, y_true):
    """mean(|(y_true - y_pred) / (y_true + 1e-8)|) * 100 computed via Pallas."""
    assert y_pred.shape == y_true.shape
    n_elem = y_pred.size
    itemsize = jnp.dtype(y_pred.dtype).itemsize

    p_flat = jnp.ravel(y_pred)
    t_flat = jnp.ravel(y_true)

    # Only pad up to the next multiple of 128 lanes; zero-padding is safe since
    # |(0-0)/(0+eps)| == 0. For lane-aligned sizes (e.g. the example) this is a
    # no-op, so no extra HBM copy is made.
    rem = n_elem % LANES
    if rem:
        pad = LANES - rem
        p_flat = jnp.pad(p_flat, (0, pad))
        t_flat = jnp.pad(t_flat, (0, pad))
    rows = p_flat.size // LANES

    # Keep the native input dtype on the DMA; cast to f32 inside the kernel.
    p2d = p_flat.reshape(rows, LANES)
    t2d = t_flat.reshape(rows, LANES)

    tm = _choose_tile_rows(rows, itemsize)
    num_blocks = pl.cdiv(rows, tm)
    needs_mask = (rows % tm) != 0

    kernel = functools.partial(
        _mape_partial_kernel, rows_total=rows, tm=tm, needs_mask=needs_mask
    )

    cost = pl.CostEstimate(
        flops=4 * n_elem,
        transcendentals=n_elem,  # one EUP reciprocal per element
        bytes_accessed=2 * n_elem * itemsize + num_blocks * SUBLANES * LANES * 4,
    )

    partials = pl.pallas_call(
        kernel,
        out_shape=jax.ShapeDtypeStruct((num_blocks, SUBLANES, LANES), jnp.float32),
        grid_spec=pltpu.PrefetchScalarGridSpec(
            num_scalar_prefetch=0,
            grid=(num_blocks,),
            in_specs=[
                pl.BlockSpec((tm, LANES), lambda i: (i, 0)),
                pl.BlockSpec((tm, LANES), lambda i: (i, 0)),
            ],
            out_specs=pl.BlockSpec((1, SUBLANES, LANES), lambda i: (i, 0, 0)),
        ),
        compiler_params=pltpu.CompilerParams(
            dimension_semantics=("parallel",),
            # 2 inputs x 2 buffers x ~4 MiB = ~16 MiB working set: raise v5e's
            # 16 MiB default scoped limit; 32 MiB fits v7x's 64 MiB physical VMEM.
            vmem_limit_bytes=32 << 20,
        ),
        cost_estimate=cost,
    )(p2d, t2d)

    # Single tiny cross-lane reduction + scalar glue in plain JAX.
    total = jnp.sum(partials)
    return (total / jnp.float32(n_elem)) * jnp.float32(100.0)


if __name__ == "__main__":
    key = jax.random.PRNGKey(0)
    k1, k2 = jax.random.split(key)
    # NCHW-shaped example inputs, consistent with a typical regression target.
    y_pred = jax.random.normal(k1, (2, 4, 16, 16), dtype=jnp.float32)
    y_true = jax.random.normal(k2, (2, 4, 16, 16), dtype=jnp.float32) + 2.0

    loss = jax.block_until_ready(mape_loss(y_pred, y_true))

    # Reference check in plain JAX.
    ref = jnp.mean(jnp.abs((y_true - y_pred) / (y_true + 1e-8))) * 100.0
    assert jnp.allclose(loss, ref, rtol=1e-5, atol=1e-4), (loss, ref)

    print("KERNEL_OK")
</pallas_src>

<mosaic_0001>
module attributes {stable_mosaic.version = 11 : i64} {
  func.func @_mape_partial_kernel(%arg0: i32, %arg1: memref<16x128xf32, #tpu.memory_space<vmem>>, %arg2: memref<16x128xf32, #tpu.memory_space<vmem>>, %arg3: memref<1x8x128xf32, #tpu.memory_space<vmem>>) attributes {dimension_semantics = [#tpu.dimension_semantics<parallel>], iteration_bounds = array<i64: 1>, scalar_prefetch = 0 : i64, scratch_operands = 0 : i64, tpu.core_type = #tpu.core_type<tc>, window_params = [{transform_indices = @transform_0, window_bounds = array<i64: 16, 128>}, {transform_indices = @transform_1, window_bounds = array<i64: 16, 128>}, {transform_indices = @transform_2, window_bounds = array<i64: 1, 8, 128>}]} {
    %c0 = arith.constant 0 : index
    %c0_0 = arith.constant 0 : index
    %0 = vector.load %arg1[%c0, %c0_0] : memref<16x128xf32, #tpu.memory_space<vmem>>, vector<16x128xf32>
    %c0_1 = arith.constant 0 : index
    %c0_2 = arith.constant 0 : index
    %1 = vector.load %arg2[%c0_1, %c0_2] : memref<16x128xf32, #tpu.memory_space<vmem>>, vector<16x128xf32>
    %cst = arith.constant 9.99999993E-9 : f32
    %2 = vector.broadcast %cst : f32 to vector<16x128xf32>
    %3 = arith.addf %1, %2 : vector<16x128xf32>
    %4 = tpu.reciprocal %3 : vector<16x128xf32> -> vector<16x128xf32>
    %5 = arith.subf %1, %0 : vector<16x128xf32>
    %6 = arith.mulf %5, %4 : vector<16x128xf32>
    %7 = math.absf %6 : vector<16x128xf32>
    %8 = vector.shape_cast %7 : vector<16x128xf32> to vector<2x8x128xf32>
    %cst_3 = arith.constant dense<0.000000e+00> : vector<8x128xf32>
    %9 = vector.multi_reduction <add>, %8, %cst_3 [0] : vector<2x8x128xf32> to vector<8x128xf32>
    %10 = vector.shape_cast %9 : vector<8x128xf32> to vector<1x8x128xf32>
    %c0_4 = arith.constant 0 : index
    %c0_5 = arith.constant 0 : index
    %c0_6 = arith.constant 0 : index
    %11 = vector.load %arg3[%c0_4, %c0_5, %c0_6] : memref<1x8x128xf32, #tpu.memory_space<vmem>>, vector<1x8x128xf32>
    tpu.vector_store %arg3[%c0_4, %c0_5, %c0_6], %10 {strides = array<i32>} : memref<1x8x128xf32, #tpu.memory_space<vmem>>, vector<1x8x128xf32>,
    return
  }
  func.func @transform_0(%arg0: i32) -> (i32, i32) {
    %c0_i32 = arith.constant 0 : i32
    %c0_i32_0 = arith.constant 0 : i32
    return %arg0, %c0_i32 : i32, i32
  }
  func.func @transform_1(%arg0: i32) -> (i32, i32) {
    %c0_i32 = arith.constant 0 : i32
    %c0_i32_0 = arith.constant 0 : i32
    return %arg0, %c0_i32 : i32, i32
  }
  func.func @transform_2(%arg0: i32) -> (i32, i32, i32) {
    %c0_i32 = arith.constant 0 : i32
    %c0_i32_0 = arith.constant 0 : i32
    %c0_i32_1 = arith.constant 0 : i32
    return %arg0, %c0_i32, %c0_i32_0 : i32, i32, i32
  }
}

</mosaic_0001>

<bundles_post_ra>
// kernel: tpu_custom_call.1
= control target key start
LH: loop header
LB: loop body
LE: loop exit
PB: predicated region body
PF: predicated region fallthrough
CT: control target
= control target key end

     0   :  { %7 = vsyncpa [#allocation3], 0  ;;  %s176_s0 = inlined_call_operand.hbm [shape: f32[16,128], index: 0, kind: input, shape index: {}]   ;;  %s177_s1 = inlined_call_operand.hbm [shape: f32[16,128], index: 1, kind: input, shape index: {}]   ;;  %s178_s2 = inlined_call_operand.hbm [shape: f32[1,8,128], index: 2, kind: output, shape index: {}]  }
   0x1   :  { %8 = vsyncpa [#allocation6], 0 }
   0x2   :  { %9 = vsyncpa [#allocation4], 0  ;;  %s147_s9 = smov [#allocation2]  }
   0x3   :  { %s15_s10 = sshll.u32 %s147_s9, 4  ;;  %s16_s10 = int_to_ptr.vmem [resolvable:$true] %s15_s10 }
   0x4   :  { %s89_s11 = scalar_lea.vmem %s16_s10, 256  ;;  %p94_p1 = scmp.lt.s32.totalorder %s16_s10, %s16_s10 }
   0x5   :  { %p90_p0 = scmp.ne.s32.totalorder %s16_s10, %s89_s11  ;;  %p95_p2 = scmp.lt.s32.totalorder %s89_s11, %s89_s11 }
   0x7   :  { %p96_p3 = por %p95_p2, %p94_p1 }
   0x9   :  { %p97_p4 = pnand %p96_p3, %p90_p0 }
   0xb   :  { %100 = shalt.err (!%p97_p4)
}
   0xc   :  { %s148_s12 = smov 128   ;;  %s149_s13 = smov 8  }
   0xd   :  { %21 = dma.hbm_to_vmem [thread:$0]  %s176_s0, 256, %s16_s10, [#allocation3], %s148_s12, %s148_s12, %s149_s13  }
   0xe   :  { %s150_s16 = smov [#allocation5]  }
   0xf   :  { %s27_s17 = sshll.u32 %s150_s16, 4  ;;  %s28_s17 = int_to_ptr.vmem [resolvable:$true] %s27_s17 }
  0x10   :  { %s109_s18 = scalar_lea.vmem %s28_s17, 256  ;;  %p114_p6 = scmp.lt.s32.totalorder %s28_s17, %s28_s17 }
  0x11   :  { %p110_p5 = scmp.ne.s32.totalorder %s28_s17, %s109_s18  ;;  %p115_p7 = scmp.lt.s32.totalorder %s109_s18, %s109_s18 }
  0x13   :  { %p116_p8 = por %p115_p7, %p114_p6 }
  0x15   :  { %p117_p9 = pnand %p116_p8, %p110_p5 }
  0x17   :  { %120 = shalt.err (!%p117_p9)
}
  0x18   :  { %33 = dma.hbm_to_vmem [thread:$0]  %s177_s1, 256, %s28_s17, [#allocation6], %s148_s12, %s148_s12, %s149_s13  }
  0x19   :  { %141 = dma.done.wait [#allocation3], 256  }
  0x1a   :  { %142 = vsyncadd [#allocation3], 4294967040 }
  0x1b   :  { %143 = dma.done.wait [#allocation6], 256  }
  0x1c   :  { %144 = vsyncadd [#allocation6], 4294967040  ;;  %v42_v0 = vld [vmem:[#allocation5] sm:$0xff]  ;;  %v43_v1 = vld [vmem:[#allocation5 + $0x8] sm:$0xff]  ;;  %s151_s0 = smov [#allocation7]  }
  0x1d   :  { %v44_v2 = vadd.f32 1e-08, %v42_v0  ;;  %v45_v3 = vadd.f32 1e-08, %v43_v1  ;;  %v40_v4 = vld [vmem:[#allocation2] sm:$0xff]  ;;  %v41_v5 = vld [vmem:[#allocation2 + $0x8] sm:$0xff] }
  0x1e   :  { %v48_v6 = vsub.f32 %v42_v0, %v40_v4  ;;  %v49_v7 = vsub.f32 %v43_v1, %v41_v5  ;;  %s62_s1 = sshll.u32 %s151_s0, 4  ;;  %s63_s1 = int_to_ptr.vmem [resolvable:$true] %s62_s1 }
  0x1f   :  { %77 = vrcp.f32 %v44_v2  ;;  %s121_s21 = scalar_lea.vmem %s63_s1, 128  ;;  %p126_p11 = scmp.lt.s32.totalorder %s63_s1, %s63_s1 }
  0x20   :  { %79 = vrcp.f32 %v45_v3  ;;  %p122_p10 = scmp.ne.s32.totalorder %s63_s1, %s121_s21  ;;  %p127_p12 = scmp.lt.s32.totalorder %s121_s21, %s121_s21 }
  0x22   :  { %p128_p13 = por %p127_p12, %p126_p11 }
  0x24   :  { %p129_p0 = pnand %p128_p13, %p122_p10 }
  0x2c   :  { %v78_v8 = vpop.eup %77 }
  0x2d   :  { %v80_v9 = vpop.eup %79  ;;  %v50_v10 = vmul.f32 %v78_v8, %v48_v6 }
  0x2e   :  { %v51_v11 = vmul.f32 %v80_v9, %v49_v7 }
  0x2f   :  { %v52_v12 = vand.u32 2147483647, %v50_v10 }
  0x30   :  { %v53_v13 = vand.u32 2147483647, %v51_v11 }
  0x32   :  { %v54_v14 = vadd.f32 %v53_v13, %v52_v12 }
  0x34   :  { %55 = vst [vmem:[#allocation7] sm:$0xff] %v54_v14 }
  0x35   :  { %132 = shalt.err (!%p129_p0)
}
  0x36   :  { %65 = dma.vmem_to_hbm [thread:$0]  %s63_s1, 128, %s178_s2, [#allocation4]  }
  0x37   :  { %145 = dma.done.wait [#allocation4], 128  }
  0x38   :  { %146 = vsyncadd [#allocation4], 4294967168 }
  0x39   :  { %69 = vsyncpa [#allocation3], 1 }
  0x3a   :  { %70 = vsyncpa [#allocation6], 1 }
  0x3b   :  { %71 = vsyncpa [#allocation4], 1 }

</bundles_post_ra>
